<compile_context>
chip_gen: v6e
topology: v6e:2x2x1
jax: 0.10.0
libtpu: 0.0.40
codegen_flags: <defaults>
</compile_context>

<pallas_src>
import jax
import jax.numpy as jnp
import numpy as np
from jax import lax
from jax.experimental import pallas as pl
from jax.experimental.pallas import tpu as pltpu


def _residual_stack_kernel(x_ref, w1_ref, w2_ref, o_ref):
    """One batch element of the ResidualStack.

    x_ref : (1, C, L)               input activations, PyTorch NCL layout
    w1_ref: (layers, 3, C, Hres)    k=3 conv weights, per-tap (c_in, c_out)
                                    blocks; tap 0 -> x[l-1], 1 -> x[l], 2 -> x[l+1]
    w2_ref: (layers, Hres, C)       1x1 conv weights, (c_in, c_out)
    o_ref : (1, C, L)               output, PyTorch NCL layout
    """
    _, C, L = x_ref.shape
    n_layers = w1_ref.shape[0]

    # NCL -> (L, C): tiny 2-D XLU transpose so the channel contraction sits on
    # the lane axis for the MXU.
    xf = x_ref[0].T                                           # (L, C)

    # Sequence-edge masks for padding=1, hoisted out of the layer loop and
    # materialized once at full (L, C) shape as f32 multiplicands.
    row = lax.broadcasted_iota(jnp.int32, (L, C), 0)
    not_first = (row != 0).astype(jnp.float32)                # zero at l == 0
    not_last = (row != L - 1).astype(jnp.float32)             # zero at l == L-1

    for layer in range(n_layers):                             # static unroll
        h = jnp.tanh(xf)                                      # (L, C)
        # h[l-1] / h[l+1] via +/-1 sublane rotate (XLU) + edge masking (VPU).
        h_left = not_first * pltpu.roll(h, shift=1, axis=0)
        h_right = not_last * pltpu.roll(h, shift=L - 1, axis=0)   # == shift -1
        # kernel_size=3 conv as three accumulated f32 dots (no concatenate).
        s = (jnp.dot(h_left, w1_ref[layer, 0], preferred_element_type=jnp.float32)
             + jnp.dot(h, w1_ref[layer, 1], preferred_element_type=jnp.float32)
             + jnp.dot(h_right, w1_ref[layer, 2], preferred_element_type=jnp.float32))
        t = jnp.tanh(s)                                       # (L, Hres)
        upd = jnp.dot(t, w2_ref[layer], preferred_element_type=jnp.float32)
        xf = xf + upd                                         # residual add

    # Final F.tanh folded into the single store; back to NCL.
    o_ref[0] = jnp.tanh(xf).T                                 # (C, L)


def residual_stack_pallas(x_ncl, w1_taps, w2_flat):
    """x_ncl: (N, C, L) PyTorch layout; w1_taps: (layers, 3, C, Hres);
    w2_flat: (layers, Hres, C)."""
    N, C, L = x_ncl.shape
    n_layers, _, _, Hres = w1_taps.shape
    return pl.pallas_call(
        _residual_stack_kernel,
        out_shape=jax.ShapeDtypeStruct((N, C, L), jnp.float32),
        grid_spec=pltpu.PrefetchScalarGridSpec(
            num_scalar_prefetch=0,
            grid=(N,),
            in_specs=[
                pl.BlockSpec((1, C, L), lambda b: (b, 0, 0)),
                pl.BlockSpec((n_layers, 3, C, Hres), lambda b: (0, 0, 0, 0)),
                pl.BlockSpec((n_layers, Hres, C), lambda b: (0, 0, 0)),
            ],
            out_specs=pl.BlockSpec((1, C, L), lambda b: (b, 0, 0)),
        ),
        compiler_params=pltpu.CompilerParams(
            dimension_semantics=("parallel",)),
    )(x_ncl, w1_taps, w2_flat)


def residual_stack_reference(x_ncl, w1_torch, w2_torch):
    """Independent reference with lax.conv on the PyTorch NCL layout.

    w1_torch: (layers, Hres, C, 3)  -- Conv1d(C, Hres, 3, padding=1, bias=False).weight
    w2_torch: (layers, C, Hres, 1)  -- Conv1d(Hres, C, 1, bias=False).weight
    """
    n_layers = w1_torch.shape[0]
    x = x_ncl
    for i in range(n_layers):
        h = jnp.tanh(x)
        c1 = jax.lax.conv_general_dilated(
            h, w1_torch[i], window_strides=(1,), padding=((1, 1),),
            dimension_numbers=("NCH", "OIH", "NCH"))
        c1 = jnp.tanh(c1)
        c2 = jax.lax.conv_general_dilated(
            c1, w2_torch[i], window_strides=(1,), padding=((0, 0),),
            dimension_numbers=("NCH", "OIH", "NCH"))
        x = x + c2
    return jnp.tanh(x)


if __name__ == "__main__":
    # ResidualStack(in_channels=32, num_hiddens=32, num_residual_layers=2,
    #               num_residual_hiddens=16); input (N=2, C=32, L=16) in NCL.
    N, C, L = 2, 32, 16
    Hres = 16
    n_layers = 2

    key = jax.random.PRNGKey(0)
    kx, kw1, kw2 = jax.random.split(key, 3)

    x_ncl = jax.random.normal(kx, (N, C, L), dtype=jnp.float32)
    # PyTorch-shaped weights (deterministic synthetic init).
    w1_torch = 0.1 * jax.random.normal(kw1, (n_layers, Hres, C, 3), dtype=jnp.float32)
    w2_torch = 0.1 * jax.random.normal(kw2, (n_layers, C, Hres, 1), dtype=jnp.float32)

    # One-time weight rearrangement for the per-tap matmul formulation
    # (in a real model this is done once at parameter-load time).
    # (layers, co, ci, k) -> (layers, k, ci, co)
    w1_taps = jnp.transpose(w1_torch, (0, 3, 2, 1))
    # (layers, co, ci, 1) -> (layers, ci, co)
    w2_flat = jnp.transpose(w2_torch[..., 0], (0, 2, 1))

    out_ncl = jax.block_until_ready(
        residual_stack_pallas(x_ncl, w1_taps, w2_flat))

    ref_ncl = jax.block_until_ready(
        residual_stack_reference(x_ncl, w1_torch, w2_torch))

    np.testing.assert_allclose(np.asarray(out_ncl), np.asarray(ref_ncl),
                               rtol=1e-5, atol=1e-5)
    print("KERNEL_OK")
</pallas_src>

<mosaic_0001>
module attributes {stable_mosaic.version = 11 : i64} {
  func.func @_residual_stack_kernel(%arg0: i32, %arg1: memref<1x32x16xf32, #tpu.memory_space<vmem>>, %arg2: memref<2x3x32x16xf32, #tpu.memory_space<vmem>>, %arg3: memref<2x16x32xf32, #tpu.memory_space<vmem>>, %arg4: memref<1x32x16xf32, #tpu.memory_space<vmem>>) attributes {dimension_semantics = [#tpu.dimension_semantics<parallel>], iteration_bounds = array<i64: 2>, scalar_prefetch = 0 : i64, scratch_operands = 0 : i64, tpu.core_type = #tpu.core_type<tc>, window_params = [{transform_indices = @transform_0, window_bounds = array<i64: 1, 32, 16>}, {pipeline_mode = #tpu.pipeline_mode<synchronous>, transform_indices = @transform_1, window_bounds = array<i64: 2, 3, 32, 16>}, {pipeline_mode = #tpu.pipeline_mode<synchronous>, transform_indices = @transform_2, window_bounds = array<i64: 2, 16, 32>}, {transform_indices = @transform_3, window_bounds = array<i64: 1, 32, 16>}]} {
    %c0 = arith.constant 0 : index
    %c0_0 = arith.constant 0 : index
    %c0_1 = arith.constant 0 : index
    %0 = vector.load %arg1[%c0, %c0_0, %c0_1] : memref<1x32x16xf32, #tpu.memory_space<vmem>>, vector<1x32x16xf32>
    %1 = vector.shape_cast %0 : vector<1x32x16xf32> to vector<32x16xf32>
    %2 = tpu.transpose %1, [1, 0] : vector<32x16xf32> -> vector<16x32xf32>
    %3 = tpu.iota {dimensions = array<i32: 0>} : vector<16x32xi32>
    %c0_i32 = arith.constant 0 : i32
    %4 = vector.broadcast %c0_i32 : i32 to vector<16x32xi32>
    %5 = arith.cmpi ne, %3, %4 : vector<16x32xi32>
    %6 = arith.extui %5 : vector<16x32xi1> to vector<16x32xi32>
    %7 = arith.sitofp %6 : vector<16x32xi32> to vector<16x32xf32>
    %c15_i32 = arith.constant 15 : i32
    %8 = vector.broadcast %c15_i32 : i32 to vector<16x32xi32>
    %9 = arith.cmpi ne, %3, %8 : vector<16x32xi32>
    %10 = arith.extui %9 : vector<16x32xi1> to vector<16x32xi32>
    %11 = arith.sitofp %10 : vector<16x32xi32> to vector<16x32xf32>
    %12 = math.tanh %2 : vector<16x32xf32>
    %c1_i32 = arith.constant 1 : i32
    %13 = tpu.dynamic_rotate %12 by %c1_i32 dim 0 : vector<16x32xf32>, i32 -> vector<16x32xf32>
    %14 = arith.mulf %7, %13 : vector<16x32xf32>
    %c15_i32_2 = arith.constant 15 : i32
    %15 = tpu.dynamic_rotate %12 by %c15_i32_2 dim 0 : vector<16x32xf32>, i32 -> vector<16x32xf32>
    %16 = arith.mulf %11, %15 : vector<16x32xf32>
    %c0_3 = arith.constant 0 : index
    %c0_4 = arith.constant 0 : index
    %c0_5 = arith.constant 0 : index
    %c0_6 = arith.constant 0 : index
    %17 = vector.load %arg2[%c0_3, %c0_4, %c0_5, %c0_6] : memref<2x3x32x16xf32, #tpu.memory_space<vmem>>, vector<1x1x32x16xf32>
    %18 = vector.shape_cast %17 : vector<1x1x32x16xf32> to vector<32x16xf32>
    %cst = arith.constant dense<0.000000e+00> : vector<16x16xf32>
    %19 = tpu.matmul %14, %18, %cst {dimension_numbers = #tpu.dot_dimension_numbers<[1], [0], [0], [1], [0, 0, 1, 1], [], []>} : vector<16x32xf32>, vector<32x16xf32>, vector<16x16xf32> -> vector<16x16xf32>
    %c0_7 = arith.constant 0 : index
    %c1 = arith.constant 1 : index
    %c0_8 = arith.constant 0 : index
    %c0_9 = arith.constant 0 : index
    %20 = vector.load %arg2[%c0_7, %c1, %c0_8, %c0_9] : memref<2x3x32x16xf32, #tpu.memory_space<vmem>>, vector<1x1x32x16xf32>
    %21 = vector.shape_cast %20 : vector<1x1x32x16xf32> to vector<32x16xf32>
    %cst_10 = arith.constant dense<0.000000e+00> : vector<16x16xf32>
    %22 = tpu.matmul %12, %21, %cst_10 {dimension_numbers = #tpu.dot_dimension_numbers<[1], [0], [0], [1], [0, 0, 1, 1], [], []>} : vector<16x32xf32>, vector<32x16xf32>, vector<16x16xf32> -> vector<16x16xf32>
    %23 = arith.addf %19, %22 : vector<16x16xf32>
    %c0_11 = arith.constant 0 : index
    %c2 = arith.constant 2 : index
    %c0_12 = arith.constant 0 : index
    %c0_13 = arith.constant 0 : index
    %24 = vector.load %arg2[%c0_11, %c2, %c0_12, %c0_13] : memref<2x3x32x16xf32, #tpu.memory_space<vmem>>, vector<1x1x32x16xf32>
    %25 = vector.shape_cast %24 : vector<1x1x32x16xf32> to vector<32x16xf32>
    %cst_14 = arith.constant dense<0.000000e+00> : vector<16x16xf32>
    %26 = tpu.matmul %16, %25, %cst_14 {dimension_numbers = #tpu.dot_dimension_numbers<[1], [0], [0], [1], [0, 0, 1, 1], [], []>} : vector<16x32xf32>, vector<32x16xf32>, vector<16x16xf32> -> vector<16x16xf32>
    %27 = arith.addf %23, %26 : vector<16x16xf32>
    %28 = math.tanh %27 : vector<16x16xf32>
    %c0_15 = arith.constant 0 : index
    %c0_16 = arith.constant 0 : index
    %c0_17 = arith.constant 0 : index
    %29 = vector.load %arg3[%c0_15, %c0_16, %c0_17] : memref<2x16x32xf32, #tpu.memory_space<vmem>>, vector<1x16x32xf32>
    %30 = vector.shape_cast %29 : vector<1x16x32xf32> to vector<16x32xf32>
    %cst_18 = arith.constant dense<0.000000e+00> : vector<16x32xf32>
    %31 = tpu.matmul %28, %30, %cst_18 {dimension_numbers = #tpu.dot_dimension_numbers<[1], [0], [0], [1], [0, 0, 1, 1], [], []>} : vector<16x16xf32>, vector<16x32xf32>, vector<16x32xf32> -> vector<16x32xf32>
    %32 = arith.addf %2, %31 : vector<16x32xf32>
    %33 = math.tanh %32 : vector<16x32xf32>
    %c1_i32_19 = arith.constant 1 : i32
    %34 = tpu.dynamic_rotate %33 by %c1_i32_19 dim 0 : vector<16x32xf32>, i32 -> vector<16x32xf32>
    %35 = arith.mulf %7, %34 : vector<16x32xf32>
    %c15_i32_20 = arith.constant 15 : i32
    %36 = tpu.dynamic_rotate %33 by %c15_i32_20 dim 0 : vector<16x32xf32>, i32 -> vector<16x32xf32>
    %37 = arith.mulf %11, %36 : vector<16x32xf32>
    %c1_21 = arith.constant 1 : index
    %c0_22 = arith.constant 0 : index
    %c0_23 = arith.constant 0 : index
    %c0_24 = arith.constant 0 : index
    %38 = vector.load %arg2[%c1_21, %c0_22, %c0_23, %c0_24] : memref<2x3x32x16xf32, #tpu.memory_space<vmem>>, vector<1x1x32x16xf32>
    %39 = vector.shape_cast %38 : vector<1x1x32x16xf32> to vector<32x16xf32>
    %cst_25 = arith.constant dense<0.000000e+00> : vector<16x16xf32>
    %40 = tpu.matmul %35, %39, %cst_25 {dimension_numbers = #tpu.dot_dimension_numbers<[1], [0], [0], [1], [0, 0, 1, 1], [], []>} : vector<16x32xf32>, vector<32x16xf32>, vector<16x16xf32> -> vector<16x16xf32>
    %c1_26 = arith.constant 1 : index
    %c1_27 = arith.constant 1 : index
    %c0_28 = arith.constant 0 : index
    %c0_29 = arith.constant 0 : index
    %41 = vector.load %arg2[%c1_26, %c1_27, %c0_28, %c0_29] : memref<2x3x32x16xf32, #tpu.memory_space<vmem>>, vector<1x1x32x16xf32>
    %42 = vector.shape_cast %41 : vector<1x1x32x16xf32> to vector<32x16xf32>
    %cst_30 = arith.constant dense<0.000000e+00> : vector<16x16xf32>
    %43 = tpu.matmul %33, %42, %cst_30 {dimension_numbers = #tpu.dot_dimension_numbers<[1], [0], [0], [1], [0, 0, 1, 1], [], []>} : vector<16x32xf32>, vector<32x16xf32>, vector<16x16xf32> -> vector<16x16xf32>
    %44 = arith.addf %40, %43 : vector<16x16xf32>
    %c1_31 = arith.constant 1 : index
    %c2_32 = arith.constant 2 : index
    %c0_33 = arith.constant 0 : index
    %c0_34 = arith.constant 0 : index
    %45 = vector.load %arg2[%c1_31, %c2_32, %c0_33, %c0_34] : memref<2x3x32x16xf32, #tpu.memory_space<vmem>>, vector<1x1x32x16xf32>
    %46 = vector.shape_cast %45 : vector<1x1x32x16xf32> to vector<32x16xf32>
    %cst_35 = arith.constant dense<0.000000e+00> : vector<16x16xf32>
    %47 = tpu.matmul %37, %46, %cst_35 {dimension_numbers = #tpu.dot_dimension_numbers<[1], [0], [0], [1], [0, 0, 1, 1], [], []>} : vector<16x32xf32>, vector<32x16xf32>, vector<16x16xf32> -> vector<16x16xf32>
    %48 = arith.addf %44, %47 : vector<16x16xf32>
    %49 = math.tanh %48 : vector<16x16xf32>
    %c1_36 = arith.constant 1 : index
    %c0_37 = arith.constant 0 : index
    %c0_38 = arith.constant 0 : index
    %50 = vector.load %arg3[%c1_36, %c0_37, %c0_38] : memref<2x16x32xf32, #tpu.memory_space<vmem>>, vector<1x16x32xf32>
    %51 = vector.shape_cast %50 : vector<1x16x32xf32> to vector<16x32xf32>
    %cst_39 = arith.constant dense<0.000000e+00> : vector<16x32xf32>
    %52 = tpu.matmul %49, %51, %cst_39 {dimension_numbers = #tpu.dot_dimension_numbers<[1], [0], [0], [1], [0, 0, 1, 1], [], []>} : vector<16x16xf32>, vector<16x32xf32>, vector<16x32xf32> -> vector<16x32xf32>
    %53 = arith.addf %32, %52 : vector<16x32xf32>
    %54 = math.tanh %53 : vector<16x32xf32>
    %55 = tpu.transpose %54, [1, 0] : vector<16x32xf32> -> vector<32x16xf32>
    %c0_40 = arith.constant 0 : index
    %c0_41 = arith.constant 0 : index
    %c0_42 = arith.constant 0 : index
    %56 = vector.load %arg4[%c0_40, %c0_41, %c0_42] : memref<1x32x16xf32, #tpu.memory_space<vmem>>, vector<1x32x16xf32>
    %57 = vector.shape_cast %56 : vector<1x32x16xf32> to vector<32x16xf32>
    %58 = vector.shape_cast %55 : vector<32x16xf32> to vector<1x32x16xf32>
    tpu.vector_store %arg4[%c0_40, %c0_41, %c0_42], %58 {strides = array<i32>} : memref<1x32x16xf32, #tpu.memory_space<vmem>>, vector<1x32x16xf32>,
    return
  }
  func.func @transform_0(%arg0: i32) -> (i32, i32, i32) {
    %c0_i32 = arith.constant 0 : i32
    %c0_i32_0 = arith.constant 0 : i32
    %c0_i32_1 = arith.constant 0 : i32
    return %arg0, %c0_i32, %c0_i32_0 : i32, i32, i32
  }
  func.func @transform_1(%arg0: i32) -> (i32, i32, i32, i32) {
    %c0_i32 = arith.constant 0 : i32
    %c0_i32_0 = arith.constant 0 : i32
    %c0_i32_1 = arith.constant 0 : i32
    %c0_i32_2 = arith.constant 0 : i32
    %c0_i32_3 = arith.constant 0 : i32
    return %c0_i32, %c0_i32_0, %c0_i32_1, %c0_i32_2 : i32, i32, i32, i32
  }
  func.func @transform_2(%arg0: i32) -> (i32, i32, i32) {
    %c0_i32 = arith.constant 0 : i32
    %c0_i32_0 = arith.constant 0 : i32
    %c0_i32_1 = arith.constant 0 : i32
    %c0_i32_2 = arith.constant 0 : i32
    return %c0_i32, %c0_i32_0, %c0_i32_1 : i32, i32, i32
  }
  func.func @transform_3(%arg0: i32) -> (i32, i32, i32) {
    %c0_i32 = arith.constant 0 : i32
    %c0_i32_0 = arith.constant 0 : i32
    %c0_i32_1 = arith.constant 0 : i32
    return %arg0, %c0_i32, %c0_i32_0 : i32, i32, i32
  }
}

</mosaic_0001>

<bundles_post_ra>
// kernel: tpu_custom_call.1
= control target key start
LH: loop header
LB: loop body
LE: loop exit
PB: predicated region body
PF: predicated region fallthrough
CT: control target
= control target key end

     0   :  { %s1276_s12 = smov 0   ;;  %s1442_s0 = inlined_call_operand.vmem [shape: f32[2,32,16], index: 0, kind: input, shape index: {}]   ;;  %s1443_s1 = inlined_call_operand.vmem [shape: f32[2,3,32,16], index: 1, kind: input, shape index: {}]   ;;  %s1444_s2 = inlined_call_operand.vmem [shape: f32[2,16,32], index: 2, kind: input, shape index: {}]   ;;  %s1445_s3 = inlined_call_operand.vmem [shape: f32[2,32,16], index: 3, kind: output, shape index: {}]  }
   0x1 LB: > { %s1041_s13 = sadd.s32 4294967295, %s1253_s12   ;;  %p1045_p0 = scmp.ge.s32.totalorder %s1253_s12, 1  ;;  %s1253_s12 = sphi %s1276_s12, %s13_s12  }
   0x2   : > { %p137_p1 = scmp.lt.s32.totalorder %s1253_s12, 3 }
   0x4   : > { %p138_p2 = pnand %p1045_p0, %p137_p1 }
   0x5   : > { %p161_p3 = scmp.lt.s32.totalorder (!%p138_p2), %s1041_s13, 1 }
   0x6   : > { %141 = sbr.rel (%p138_p2) target bundleno = 1159 (0x487), region = 32 }
   0xb   : > { %s1447_s13 = smov (!%p161_p3, %s1041_s13), 1  ;;  %v1055_v2 = vld [vmem:[%s1443_s1 + $0x38] sm:$0xff]  ;;  %v1054_v3 = vld [vmem:[%s1443_s1 + $0x30] sm:$0xff]  ;;  %v1053_v4 = vld [vmem:[%s1443_s1 + $0x28] sm:$0xff]  ;;  %v207_v15 = vlaneseq  ;;  %vm247_vm0 = vcmask 261120   ;;  %v1255_v21 = vmov 0.0  }
   0xc   : > { %s1092_s14 = sshll.u32 %s1447_s13, 5  ;;  %1138 = vmatprep.subr.mxu0 %v1055_v2  ;;  %v1052_v7 = vld [vmem:[%s1443_s1 + $0x20] sm:$0xff]  ;;  %v241_v8 = vld [vmem:[%s1443_s1 + $0x18] sm:$0xff]  ;;  %v240_v10 = vld [vmem:[%s1443_s1 + $0x10] sm:$0xff]  ;;  %vm502_vm5 = vcmask 130048  }
   0xd   : > { %s165_s17 = scalar_lea.vmem %s1442_s0, %s1092_s14  ;;  %1139 = vmatpush3.msra.mxu0 %v1055_v2  ;;  %v1063_v9 = vld [vmem:[%s1443_s1 + $0x58] sm:$0xff]  ;;  %1149 = vmatprep.subr.mxu1 %v241_v8  ;;  %v239_v11 = vld [vmem:[%s1443_s1 + $0x8] sm:$0xff]  ;;  %v238_v12 = vld [vmem:[%s1443_s1] sm:$0xff]  ;;  %v1325_v16 = vshrl.u32 %v207_v15, 7  ;;  %s170_s28 = scalar_lea.vmem %s1445_s3, %s1092_s14 }
   0xe   : > { %v171_v0 = vld [vmem:[%s165_s17] sm:$0xff]  ;;  %v172_v1 = vld [vmem:[%s165_s17 + $0x8] sm:$0xff]  ;;  %1140 = vmatprep.subr.mxu0 %v1054_v3  ;;  %v173_v5 = vld [vmem:[%s165_s17 + $0x10] sm:$0xff]  ;;  %1150 = vmatpush3.msra.mxu1 %v241_v8 }
   0xf   : > { %175 = vxpose.xlu0.b32.start [1/4] (short) (narrow) %v171_v0, 16  ;;  %1141 = vmatpush3.msra.mxu0 %v1054_v3  ;;  %v174_v6 = vld [vmem:[%s165_s17 + $0x18] sm:$0xff]  ;;  %v209_v18 = vadd.s32 8, %v1325_v16  ;;  %vm210_vm1 = vcmp.ne.s32.totalorder %v1325_v16, 0  ;;  %v1062_v20 = vld [vmem:[%s1443_s1 + $0x50] sm:$0xff]  ;;  %vm233_vm2 = vcmp.lt.s32.totalorder %v1325_v16, 7 }
  0x10   : > { %1142 = vmatprep.subr.mxu0 %v1053_v4  ;;  %1151 = vmatprep.subr.mxu1 %v240_v10  ;;  %v1334_v22 = vsel %vm210_vm1, 1.0, %v1255_v21  ;;  %vm226_vm4 = vcmp.lt.s32.totalorder %v1325_v16, 1  ;;  %v1061_v27 = vld [vmem:[%s1443_s1 + $0x48] sm:$0xff]  ;;  %v1060_v33 = vld [vmem:[%s1443_s1 + $0x40] sm:$0xff]  ;;  %v1075_v50 = vld [vmem:[%s1443_s1 + $0x98] sm:$0xff] }
  0x11   : > { %1143 = vmatpush3.msra.mxu0 %v1053_v4  ;;  %1152 = vmatpush3.msra.mxu1 %v240_v10  ;;  %vm217_vm3 = vcmp.ne.s32.totalorder %v209_v18, 15  ;;  %v501_v36 = vld [vmem:[%s1444_s2 + $0x8] sm:$0xff]  ;;  %v500_v37 = vld [vmem:[%s1444_s2] sm:$0xff]  ;;  %v1074_v51 = vld [vmem:[%s1443_s1 + $0x90] sm:$0xff] }
  0x12   : > { %1144 = vmatprep.subr.mxu0 %v1052_v7  ;;  %1153 = vmatprep.subr.mxu1 %v239_v11  ;;  %v1346_v30 = vsel %vm217_vm3, 1.0, %v1255_v21  ;;  %v1071_v52 = vld [vmem:[%s1443_s1 + $0x78] sm:$0xff]  ;;  %v1073_v53 = vld [vmem:[%s1443_s1 + $0x88] sm:$0xff]  ;;  %v1072_v54 = vld [vmem:[%s1443_s1 + $0x80] sm:$0xff] }
  0x13   : > { %176 = vxpose.xlu0.b32.cont [2/4] (short) (narrow) %v172_v1, 16  ;;  %1145 = vmatpush3.msra.mxu0 %v1052_v7  ;;  %v1070_v55 = vld [vmem:[%s1443_s1 + $0x70] sm:$0xff]  ;;  %v1083_v56 = vld [vmem:[%s1443_s1 + $0xb8] sm:$0xff]  ;;  %v1069_v57 = vld [vmem:[%s1443_s1 + $0x68] sm:$0xff] }
  0x14   : > { %1160 = vmatprep.subr.mxu0 %v1063_v9  ;;  %1154 = vmatpush3.msra.mxu1 %v239_v11  ;;  %v1068_v58 = vld [vmem:[%s1443_s1 + $0x60] sm:$0xff]  ;;  %v1082_v1 = vld [vmem:[%s1443_s1 + $0xb0] sm:$0xff]  ;;  %v1081_v7 = vld [vmem:[%s1443_s1 + $0xa8] sm:$0xff] }
  0x15   : > { %1155 = vmatprep.subr.mxu1 %v238_v12  ;;  %v1080_v11 = vld [vmem:[%s1443_s1 + $0xa0] sm:$0xff]  ;;  %v1086_v15 = vld [vmem:[%s1444_s2 + $0x10] sm:$0xff] }
  0x16   : > { %1156 = vmatpush3.msra.mxu1 %v238_v12 }
  0x17   : > { %177 = vxpose.xlu0.b32.cont [3/4] (short) (narrow) %v173_v5, 16  ;;  %1171 = vmatprep.subr.mxu1 %v501_v36 }
  0x1b   : > { %178 = vxpose.xlu0.b32.end [4/4] (short) (narrow) %v174_v6, 16 }
  0x8b   : > { %v1319_v13 = vpop.trf.xlu0 }
  0x8c   : > { %1227 = vtanh.f32 %v1319_v13 }
  0x8f   : > { %v1322_v14 = vpop.trf.xlu0 }
  0x90   : > { %1229 = vtanh.f32 %v1322_v14 }
  0x99   : > { %v1228_v17 = vpop.eup %1227 }
  0x9a   : > { %1146 = vmatprep.mubr.msk.f32.mxu0 %vm247_vm0, %v1228_v17  ;;  %v231_v23 = vrot.slane %v1228_v17, 1  ;;  %v224_v25 = vrot.slane %v1228_v17, 7 }
  0x9d   : > { %v1230_v19 = vpop.eup %1229 }
  0x9e   : > { %1147 = vmatmul.mubr.msk.f32.vlgmr.msra.gmra.mxu0 %vm247_vm0, %v1230_v19  ;;  %v232_v24 = vrot.slane %v1230_v19, 1  ;;  %v225_v26 = vrot.slane %v1230_v19, 7 }
  0x9f   : > { %1161 = vmatpush3.msra.mxu0 %v1063_v9 }
  0xa0   : > { %1162 = vmatprep.subr.mxu0 %v1062_v20  ;;  %v234_v28 = vsel %vm233_vm2, %v231_v23, %v232_v24  ;;  %v228_v29 = vsel %vm226_vm4, %v225_v26, %v224_v25  ;;  %v235_v32 = vsel %vm233_vm2, %v232_v24, %v231_v23  ;;  %v227_v34 = vsel %vm226_vm4, %v224_v25, %v225_v26 }
  0xa1   : > { %1163 = vmatpush3.msra.mxu0 %v1062_v20  ;;  %1168 = vmatprep.mubr.msk.f32.mxu0 %vm247_vm0, %v234_v28  ;;  %v229_v31 = vmul.f32 %v1334_v22, %v228_v29  ;;  %v237_v35 = vmul.f32 %v1346_v30, %v235_v32 }
  0xa2   : > { %1164 = vmatprep.subr.mxu0 %v1061_v27 }
  0xa3   : > { %1165 = vmatpush3.msra.mxu0 %v1061_v27  ;;  %1157 = vmatprep.mubr.msk.f32.mxu1 %vm247_vm0, %v229_v31 }
  0xa4   : > { %1166 = vmatprep.subr.mxu0 %v1060_v33  ;;  %1158 = vmatmul.mubr.msk.f32.vlgmr.msra.gmra.mxu1 %vm247_vm0, %v227_v34 }
  0xa5   : > { %1167 = vmatpush3.msra.mxu0 %v1060_v33  ;;  %1172 = vmatpush3.msra.mxu1 %v501_v36 }
  0xa6   : > { %1169 = vmatmul.mubr.msk.f32.vlgmr.msra.gmra.mxu0 %vm247_vm0, %v237_v35  ;;  %1173 = vmatprep.subr.mxu1 %v500_v37 }
  0xa7   : > { %1174 = vmatpush3.msra.mxu1 %v500_v37  ;;  %1189 = vmatprep.subr.mxu0 %v1071_v52 }
  0xa8   : > { %1178 = vmatprep.subr.mxu1 %v1075_v50  ;;  %1190 = vmatpush3.msra.mxu0 %v1071_v52 }
  0xa9   : > { %1191 = vmatprep.subr.mxu0 %v1070_v55 }
  0xaa   : > { %1192 = vmatpush3.msra.mxu0 %v1070_v55 }
  0xab   : > { %1193 = vmatprep.subr.mxu0 %v1069_v57 }
  0xac   : > { %1194 = vmatpush3.msra.mxu0 %v1069_v57 }
  0xad   : > { %1195 = vmatprep.subr.mxu0 %v1068_v58 }
  0xae   : > { %1196 = vmatpush3.msra.mxu0 %v1068_v58 }
 0x15e   : > { %v1148_v38 = vpop.f32.mrf.mxu0 }
 0x160   : > { %v320_v39 = vpop.f32.mrf.mxu0 }
 0x164   : > { %v1159_v40 = vpop.f32.mrf.mxu1 }
 0x165   : > { %v407_v41 = vadd.f32 %v1159_v40, %v1148_v38 }
 0x166   : > { %v1170_v42 = vpop.f32.mrf.mxu0  ;;  %v401_v43 = vpop.f32.mrf.mxu1 }
 0x167   : > { %v402_v44 = vadd.f32 %v401_v43, %v320_v39  ;;  %v497_v45 = vadd.f32 %v1170_v42, %v407_v41 }
 0x168   : > { %v487_v46 = vpop.f32.mrf.mxu0 }
 0x169   : > { %v496_v47 = vadd.f32 %v487_v46, %v402_v44 }
 0x16b   : > { %1231 = vtanh.f32 %v496_v47 }
 0x16c   : > { %1233 = vtanh.f32 %v497_v45 }
 0x178   : > { %v1232_v48 = vpop.eup %1231 }
 0x179   : > { %v1234_v49 = vpop.eup %1233  ;;  %1175 = vmatprep.mubr.msk.f32.mxu1 %vm502_vm5, %v1232_v48 }
 0x17a   : > { %1176 = vmatmul.mubr.msk.f32.vlgmr.msra.gmra.mxu1 %vm502_vm5, %v1234_v49 }
 0x17b   : > { %1179 = vmatpush3.msra.mxu1 %v1075_v50 }
 0x17c   : > { %1180 = vmatprep.subr.mxu1 %v1074_v51 }
 0x17d   : > { %1181 = vmatpush3.msra.mxu1 %v1074_v51 }
 0x17e   : > { %1182 = vmatprep.subr.mxu1 %v1073_v53 }
 0x17f   : > { %1183 = vmatpush3.msra.mxu1 %v1073_v53 }
 0x180   : > { %1184 = vmatprep.subr.mxu1 %v1072_v54 }
 0x181   : > { %1185 = vmatpush3.msra.mxu1 %v1072_v54 }
 0x182   : > { %1200 = vmatprep.subr.mxu1 %v1083_v56 }
 0x23a   : > { %v1177_v59 = vpop.f32.mrf.mxu1 }
 0x23b   : > { %v585_v60 = vadd.f32 %v1177_v59, %v1322_v14  ;;  %v1087_v14 = vld [vmem:[%s1444_s2 + $0x18] sm:$0xff] }
 0x23c   : > { %v575_v61 = vpop.f32.mrf.mxu1  ;;  %1211 = vmatprep.subr.mxu0 %v1087_v14 }
 0x23d   : > { %1235 = vtanh.f32 %v585_v60  ;;  %v584_v62 = vadd.f32 %v575_v61, %v1319_v13 }
 0x23f   : > { %1237 = vtanh.f32 %v584_v62 }
 0x24a   : > { %v1236_v63 = vpop.eup %1235 }
 0x24b   : > { %v595_v3 = vrot.slane %v1236_v63, 1  ;;  %v589_v5 = vrot.slane %v1236_v63, 7 }
 0x24c   : > { %v1238_v0 = vpop.eup %1237 }
 0x24d   : > { %1186 = vmatprep.mubr.msk.f32.mxu1 %vm247_vm0, %v1238_v0  ;;  %v594_v2 = vrot.slane %v1238_v0, 1  ;;  %v588_v4 = vrot.slane %v1238_v0, 7 }
 0x24e   : > { %1187 = vmatmul.mubr.msk.f32.vlgmr.msra.gmra.mxu1 %vm247_vm0, %v1236_v63 }
 0x24f   : > { %1201 = vmatpush3.msra.mxu1 %v1083_v56  ;;  %v596_v6 = vsel %vm233_vm2, %v594_v2, %v595_v3  ;;  %v591_v8 = vsel %vm226_vm4, %v589_v5, %v588_v4  ;;  %v597_v10 = vsel %vm233_vm2, %v595_v3, %v594_v2  ;;  %v590_v12 = vsel %vm226_vm4, %v588_v4, %v589_v5 }
 0x250   : > { %1202 = vmatprep.subr.mxu1 %v1082_v1  ;;  %1208 = vmatprep.mubr.msk.f32.mxu1 %vm247_vm0, %v596_v6  ;;  %v592_v9 = vmul.f32 %v1334_v22, %v591_v8  ;;  %v599_v13 = vmul.f32 %v1346_v30, %v597_v10 }
 0x251   : > { %1203 = vmatpush3.msra.mxu1 %v1082_v1 }
 0x252   : > { %1204 = vmatprep.subr.mxu1 %v1081_v7  ;;  %1197 = vmatprep.mubr.msk.f32.mxu0 %vm247_vm0, %v592_v9 }
 0x253   : > { %1205 = vmatpush3.msra.mxu1 %v1081_v7  ;;  %1198 = vmatmul.mubr.msk.f32.vlgmr.msra.gmra.mxu0 %vm247_vm0, %v590_v12 }
 0x254   : > { %1206 = vmatprep.subr.mxu1 %v1080_v11  ;;  %1212 = vmatpush3.msra.mxu0 %v1087_v14 }
 0x255   : > { %1207 = vmatpush3.msra.mxu1 %v1080_v11  ;;  %1213 = vmatprep.subr.mxu0 %v1086_v15 }
 0x256   : > { %1209 = vmatmul.mubr.msk.f32.vlgmr.msra.gmra.mxu1 %vm247_vm0, %v599_v13  ;;  %1214 = vmatpush3.msra.mxu0 %v1086_v15 }
 0x30e   : > { %v1188_v16 = vpop.f32.mrf.mxu1 }
 0x310   : > { %v682_v18 = vpop.f32.mrf.mxu1 }
 0x313   : > { %v1199_v17 = vpop.f32.mrf.mxu0 }
 0x314   : > { %v769_v19 = vadd.f32 %v1199_v17, %v1188_v16 }
 0x315   : > { %v763_v20 = vpop.f32.mrf.mxu0 }
 0x316   : > { %v764_v21 = vadd.f32 %v763_v20, %v682_v18  ;;  %v1210_v22 = vpop.f32.mrf.mxu1 }
 0x317   : > { %v859_v23 = vadd.f32 %v1210_v22, %v769_v19 }
 0x318   : > { %v849_v24 = vpop.f32.mrf.mxu1 }
 0x319   : > { %v858_v25 = vadd.f32 %v849_v24, %v764_v21 }
 0x31b   : > { %1239 = vtanh.f32 %v858_v25 }
 0x31c   : > { %1241 = vtanh.f32 %v859_v23 }
 0x328   : > { %v1240_v26 = vpop.eup %1239 }
 0x329   : > { %v1242_v27 = vpop.eup %1241  ;;  %1215 = vmatprep.mubr.msk.f32.mxu0 %vm502_vm5, %v1240_v26 }
 0x32a   : > { %1216 = vmatmul.mubr.msk.f32.vlgmr.msra.gmra.mxu0 %vm502_vm5, %v1242_v27 }
 0x3ea   : > { %v1217_v28 = vpop.f32.mrf.mxu0 }
 0x3eb   : > { %v947_v31 = vadd.f32 %v1217_v28, %v585_v60 }
 0x3ec   : > { %v937_v29 = vpop.f32.mrf.mxu0 }
 0x3ed   : > { %v946_v30 = vadd.f32 %v937_v29, %v584_v62 }
 0x3ef   : > { %1243 = vtanh.f32 %v946_v30 }
 0x3f0   : > { %1245 = vtanh.f32 %v947_v31 }
 0x3fc   : > { %v1244_v32 = vpop.eup %1243 }
 0x3fd   : > { %950 = vxpose.xlu1.b32.start [1/2] (short) (narrow) %v1244_v32, 32  ;;  %v1246_v33 = vpop.eup %1245 }
 0x401   : > { %951 = vxpose.xlu1.b32.end [2/2] (short) (narrow) %v1246_v33, 32 }
 0x479   : > { %v966_v34 = vpop.trf.xlu1 }
 0x47a   : > { %982 = vst.msk [vmem:[%s170_s28] sm:$0xff] %vm502_vm5, %v966_v34 }
 0x47d   : > { %v967_v35 = vpop.trf.xlu1 }
 0x47e   : > { %983 = vst.msk [vmem:[%s170_s28 + $0x8] sm:$0xff] %vm502_vm5, %v967_v35 }
 0x481   : > { %v968_v36 = vpop.trf.xlu1 }
 0x482   : > { %984 = vst.msk [vmem:[%s170_s28 + $0x10] sm:$0xff] %vm502_vm5, %v968_v36 }
 0x485   : > { %v969_v37 = vpop.trf.xlu1 }
 0x486   : > { %985 = vst.msk [vmem:[%s170_s28 + $0x18] sm:$0xff] %vm502_vm5, %v969_v37 }
 0x487 PF: > { %s13_s12 = sadd.s32 1, %s1253_s12  }
 0x488   : > { %p10_p4 = scmp.ge.s32.totalorder %s13_s12, 4  }
 0x48a   :  { %12 = sbr.rel (!%p10_p4) target bundleno = 1 (0x1), region = 68 }

</bundles_post_ra>
